<compile_context>
chip_gen: v7x
topology: tpu7x:2x2x1
jax: 0.10.0
libtpu: 0.0.40
codegen_flags: <defaults>
</compile_context>

<pallas_src>
import functools

import jax
import jax.numpy as jnp
from jax.experimental import pallas as pl
from jax.experimental.pallas import tpu as pltpu

_EPS = 1e-5


# --------------------------------------------------------------------------
# Kernels
# --------------------------------------------------------------------------
def _ln_rows_kernel(x_ref, w_ref, b_ref, o_ref, *, inv_n):
    # x_ref: (TR, C) tile of independent rows; w_ref/b_ref: (1, C), resident.
    x = x_ref[...].astype(jnp.float32)
    # One-pass moments: both reductions are independent (no serialization
    # behind the mean); the (x - mu) temporary before the reduce disappears.
    s = jnp.sum(x, axis=-1, keepdims=True)
    sq = jnp.sum(x * x, axis=-1, keepdims=True)
    mean = s * inv_n
    # Clamp: E[x^2] - mean^2 can go slightly negative under cancellation (and
    # on garbage rows of the masked partial last block) -> avoid NaN in rsqrt.
    var = jnp.maximum(sq * inv_n - mean * mean, 0.0)
    y = (x - mean) * jax.lax.rsqrt(var + _EPS)
    y = y * w_ref[...].astype(jnp.float32) + b_ref[...].astype(jnp.float32)
    o_ref[...] = y.astype(o_ref.dtype)


def _ln_folded_kernel(x_ref, w_ref, b_ref, seg_ref, o_ref, *, inv_n):
    # x_ref: (TR, 128); every group of C consecutive lanes holds one logical
    # LayerNorm row (lane-dense layout for small C).
    # seg_ref: (128, 128) bf16 0/1 block-diagonal matrix, resident (hoisted out
    # of the per-step body): seg[i, j] = 1 iff lanes i and j are the same
    # logical row. dot(v, seg) is the segmented row-sum, already broadcast back
    # to every lane of its group, computed on the otherwise-idle MXU.
    x = x_ref[...].astype(jnp.float32)
    seg = seg_ref[...]

    def segsum(v):
        # Explicit bf16 hi/lo split -> exactly one MXU pass per dot, ~f32
        # accuracy (seg is 0/1 and exact in bf16; accumulation is f32).
        hi = v.astype(jnp.bfloat16)
        lo = (v - hi.astype(jnp.float32)).astype(jnp.bfloat16)
        return (jnp.dot(hi, seg, preferred_element_type=jnp.float32)
                + jnp.dot(lo, seg, preferred_element_type=jnp.float32))

    s = segsum(x)
    sq = segsum(x * x)
    mean = s * inv_n
    var = jnp.maximum(sq * inv_n - mean * mean, 0.0)
    y = (x - mean) * jax.lax.rsqrt(var + _EPS)
    y = y * w_ref[...].astype(jnp.float32) + b_ref[...].astype(jnp.float32)
    o_ref[...] = y.astype(o_ref.dtype)


# --------------------------------------------------------------------------
# Tiling helpers
# --------------------------------------------------------------------------
def _tensorcores_per_device():
    """Best-effort TensorCores per JAX device. v7x (and v4/v5p megacore) expose
    2 cores that a 'parallel' grid axis is sharded across; v2/v3/v5e/v6e expose
    1. Unknown chips default to 2 so a second core is never starved (the only
    cost of over-estimating on a 1-TC chip is one extra tiny grid step)."""
    try:
        kind = jax.devices()[0].device_kind.lower()
    except Exception:
        return 2
    for tag in ("v2", "v3", "v5 lite", "v5e", "v6 lite", "v6e"):
        if tag in kind:
            return 1
    return 2


def _round_up8(n):
    return ((int(n) + 7) // 8) * 8


def _pick_row_tile(num_rows, row_bytes, num_cores, target_block_bytes,
                   max_rows=2048):
    """Row tile for an HBM-streaming kernel.

    * ~target_block_bytes per block (a few MiB is past ~85% of the measured
      HBM roofline and amortises the ~0.35 us per-grid-step overhead), capped
      at `max_rows` rows and kept sublane-aligned (multiple of 8) unless the
      tile is the full row dimension.
    * Multi-TC chips (v7x): when the step count would be small, make it a
      near-even multiple of the core count so both cores get equal work.
    * Single-TC chips (v5e/v6e): small/medium inputs stay a single block.
    """
    num_rows = int(num_rows)
    if num_rows <= 8:
        return max(num_rows, 1)          # single block == full dim (legal)

    cap = min(int(max_rows),
              max(8, int(target_block_bytes) // max(int(row_bytes), 1)))
    cap = max(8, (cap // 8) * 8)
    steps = -(-num_rows // cap)          # ceil

    if num_cores <= 1:
        # Single TensorCore: no reason to force extra grid steps.
        return num_rows if steps <= 1 else cap

    if steps >= 8:
        # Plenty of steps: per-core imbalance is <= 1/steps, not worth shrinking.
        return cap

    # Few steps: step count = num_cores * k with near-equal block sizes.
    k = max(1, -(-num_rows // (num_cores * cap)))
    rt = _round_up8(-(-num_rows // (num_cores * k)))
    return max(8, min(rt, cap))


# --------------------------------------------------------------------------
# pallas_call wrapper
# --------------------------------------------------------------------------
def _run(kernel, x2, resident, row_tile):
    rows, width = x2.shape
    grid = (pl.cdiv(rows, row_tile),)
    in_specs = [
        # Streaming input. Partial last block is handled by Pallas masking;
        # no wrapper-side padding copy needed (rows are independent).
        pl.BlockSpec((row_tile, width), lambda i: (i, 0)),
    ]
    # Resident operands (weight / bias / seg): constant block index -> DMA'd
    # once, stay in VMEM for the whole grid.
    in_specs += [pl.BlockSpec(r.shape, lambda i: (0, 0)) for r in resident]

    return pl.pallas_call(
        kernel,
        out_shape=jax.ShapeDtypeStruct((rows, width), x2.dtype),
        grid_spec=pltpu.PrefetchScalarGridSpec(
            num_scalar_prefetch=0,
            grid=grid,
            in_specs=in_specs,
            out_specs=pl.BlockSpec((row_tile, width), lambda i: (i, 0)),
        ),
        compiler_params=pltpu.CompilerParams(
            dimension_semantics=("parallel",),
            # ~half of v7x's 64 MiB physical VMEM; actual need at ~2 MiB
            # blocks (double-buffered in+out plus f32 temporaries) is well
            # under this. Harmless headroom on v5e/v6e (128 MiB).
            vmem_limit_bytes=32 * 1024 * 1024,
        ),
    )(x2, *resident)


def withbias_layernorm(x, weight, bias):
    """LayerNorm over the last dim of x with affine weight/bias (eps=1e-5)."""
    orig_shape = x.shape
    C = int(orig_shape[-1])
    assert weight.shape == (C,) and bias.shape == (C,)

    R = 1
    for d in orig_shape[:-1]:
        R *= int(d)
    x2 = x.reshape(R, C)
    itemsize = x.dtype.itemsize

    cores = _tensorcores_per_device()
    # 2 MiB streaming blocks; with sub-f32 inputs the in-kernel f32 upcast
    # doubles live bytes, so this also keeps the compute scratch modest.
    target_block_bytes = 2 << 20

    # Lane-dense fold path: pack F = 128 // C logical rows into each 128-lane
    # kernel row. The reshape preserves row-major element order (no copy).
    fold = C < 128 and 128 % C == 0
    if fold:
        F = 128 // C
        fold = (R >= F) and (R % F == 0)
    if fold:
        L = 128
        Rf = R // F
        xf = x2.reshape(Rf, L)
        wf = jnp.tile(weight, F).reshape(1, L)
        bf = jnp.tile(bias, F).reshape(1, L)
        # Block-diagonal 0/1 "same logical row" matrix, built ONCE here
        # (hoisted out of the grid-step body) and kept resident in VMEM.
        lane = jnp.arange(L, dtype=jnp.int32) // C
        seg = (lane[:, None] == lane[None, :]).astype(jnp.bfloat16)
        rt = _pick_row_tile(Rf, L * itemsize, cores, target_block_bytes)
        kernel = functools.partial(_ln_folded_kernel, inv_n=1.0 / C)
        out = _run(kernel, xf, (wf, bf, seg), rt)
        return out.reshape(orig_shape)

    # General path: one logical row per kernel row (block last-dim == full C,
    # so any C is legal; it is lane-dense whenever C % 128 == 0).
    rt = _pick_row_tile(R, C * itemsize, cores, target_block_bytes)
    kernel = functools.partial(_ln_rows_kernel, inv_n=1.0 / C)
    out = _run(kernel, x2, (weight.reshape(1, C), bias.reshape(1, C)), rt)
    return out.reshape(orig_shape)


# --------------------------------------------------------------------------
# Reference + self-test
# --------------------------------------------------------------------------
def _reference(x, weight, bias):
    mu = jnp.mean(x, axis=-1, keepdims=True)
    var = jnp.mean((x - mu) ** 2, axis=-1, keepdims=True)
    return (x - mu) / jnp.sqrt(var + _EPS) * weight + bias


if __name__ == "__main__":
    key = jax.random.PRNGKey(0)

    # Case 1: the module's typical use — channels-last, C == normalized_shape,
    # exercises the lane-dense folded path (C=32 < 128).
    B, H, W, C = 2, 8, 8, 32
    x = jax.random.normal(key, (B, H, W, C), dtype=jnp.float32)
    weight = jnp.ones((C,), dtype=jnp.float32)   # as in WithBias_LayerNorm.__init__
    bias = jnp.zeros((C,), dtype=jnp.float32)
    y = jax.block_until_ready(withbias_layernorm(x, weight, bias))
    assert jnp.allclose(y, _reference(x, weight, bias), atol=1e-4, rtol=1e-4), \
        "mismatch vs reference (folded path)"

    # Case 2: larger, lane-aligned C with a nonzero-mean offset — exercises
    # the general row path and the variance clamp's numerical robustness.
    k2, k3, k4 = jax.random.split(jax.random.PRNGKey(0), 3)
    B2, S2, C2 = 4, 8, 256
    x2 = jax.random.normal(k2, (B2, S2, C2), dtype=jnp.float32) + 3.0
    w2 = jax.random.normal(k3, (C2,), dtype=jnp.float32)
    b2 = jax.random.normal(k4, (C2,), dtype=jnp.float32)
    y2 = jax.block_until_ready(withbias_layernorm(x2, w2, b2))
    assert jnp.allclose(y2, _reference(x2, w2, b2), atol=1e-4, rtol=1e-4), \
        "mismatch vs reference (general path)"

    print("KERNEL_OK")
</pallas_src>

<mosaic_0001>
module attributes {stable_mosaic.version = 11 : i64} {
  func.func @_ln_folded_kernel(%arg0: i32, %arg1: memref<16x128xf32, #tpu.memory_space<vmem>>, %arg2: memref<1x128xf32, #tpu.memory_space<vmem>>, %arg3: memref<1x128xf32, #tpu.memory_space<vmem>>, %arg4: memref<128x128xbf16, #tpu.memory_space<vmem>>, %arg5: memref<16x128xf32, #tpu.memory_space<vmem>>) attributes {dimension_semantics = [#tpu.dimension_semantics<parallel>], iteration_bounds = array<i64: 2>, scalar_prefetch = 0 : i64, scratch_operands = 0 : i64, tpu.core_type = #tpu.core_type<tc>, window_params = [{transform_indices = @transform_0, window_bounds = array<i64: 16, 128>}, {pipeline_mode = #tpu.pipeline_mode<synchronous>, transform_indices = @transform_1, window_bounds = array<i64: 1, 128>}, {pipeline_mode = #tpu.pipeline_mode<synchronous>, transform_indices = @transform_2, window_bounds = array<i64: 1, 128>}, {pipeline_mode = #tpu.pipeline_mode<synchronous>, transform_indices = @transform_3, window_bounds = array<i64: 128, 128>}, {transform_indices = @transform_4, window_bounds = array<i64: 16, 128>}]} {
    %c0 = arith.constant 0 : index
    %c0_0 = arith.constant 0 : index
    %0 = vector.load %arg1[%c0, %c0_0] : memref<16x128xf32, #tpu.memory_space<vmem>>, vector<16x128xf32>
    %c0_1 = arith.constant 0 : index
    %c0_2 = arith.constant 0 : index
    %1 = vector.load %arg4[%c0_1, %c0_2] : memref<128x128xbf16, #tpu.memory_space<vmem>>, vector<128x128xbf16>
    %2 = arith.truncf %0 : vector<16x128xf32> to vector<16x128xbf16>
    %3 = arith.extf %2 : vector<16x128xbf16> to vector<16x128xf32>
    %4 = arith.subf %0, %3 : vector<16x128xf32>
    %5 = arith.truncf %4 : vector<16x128xf32> to vector<16x128xbf16>
    %cst = arith.constant dense<0.000000e+00> : vector<16x128xf32>
    %6 = tpu.matmul %2, %1, %cst {dimension_numbers = #tpu.dot_dimension_numbers<[1], [0], [0], [1], [0, 0, 1, 1], [], []>} : vector<16x128xbf16>, vector<128x128xbf16>, vector<16x128xf32> -> vector<16x128xf32>
    %cst_3 = arith.constant dense<0.000000e+00> : vector<16x128xf32>
    %7 = tpu.matmul %5, %1, %cst_3 {dimension_numbers = #tpu.dot_dimension_numbers<[1], [0], [0], [1], [0, 0, 1, 1], [], []>} : vector<16x128xbf16>, vector<128x128xbf16>, vector<16x128xf32> -> vector<16x128xf32>
    %8 = arith.addf %6, %7 : vector<16x128xf32>
    %9 = arith.mulf %0, %0 : vector<16x128xf32>
    %10 = arith.truncf %9 : vector<16x128xf32> to vector<16x128xbf16>
    %11 = arith.extf %10 : vector<16x128xbf16> to vector<16x128xf32>
    %12 = arith.subf %9, %11 : vector<16x128xf32>
    %13 = arith.truncf %12 : vector<16x128xf32> to vector<16x128xbf16>
    %cst_4 = arith.constant dense<0.000000e+00> : vector<16x128xf32>
    %14 = tpu.matmul %10, %1, %cst_4 {dimension_numbers = #tpu.dot_dimension_numbers<[1], [0], [0], [1], [0, 0, 1, 1], [], []>} : vector<16x128xbf16>, vector<128x128xbf16>, vector<16x128xf32> -> vector<16x128xf32>
    %cst_5 = arith.constant dense<0.000000e+00> : vector<16x128xf32>
    %15 = tpu.matmul %13, %1, %cst_5 {dimension_numbers = #tpu.dot_dimension_numbers<[1], [0], [0], [1], [0, 0, 1, 1], [], []>} : vector<16x128xbf16>, vector<128x128xbf16>, vector<16x128xf32> -> vector<16x128xf32>
    %16 = arith.addf %14, %15 : vector<16x128xf32>
    %cst_6 = arith.constant 3.125000e-02 : f32
    %17 = vector.broadcast %cst_6 : f32 to vector<16x128xf32>
    %18 = arith.mulf %8, %17 : vector<16x128xf32>
    %cst_7 = arith.constant 3.125000e-02 : f32
    %19 = vector.broadcast %cst_7 : f32 to vector<16x128xf32>
    %20 = arith.mulf %16, %19 : vector<16x128xf32>
    %21 = arith.mulf %18, %18 : vector<16x128xf32>
    %22 = arith.subf %20, %21 : vector<16x128xf32>
    %cst_8 = arith.constant 0.000000e+00 : f32
    %23 = vector.broadcast %cst_8 : f32 to vector<16x128xf32>
    %24 = arith.maximumf %22, %23 : vector<16x128xf32>
    %25 = arith.subf %0, %18 : vector<16x128xf32>
    %cst_9 = arith.constant 9.99999974E-6 : f32
    %26 = vector.broadcast %cst_9 : f32 to vector<16x128xf32>
    %27 = arith.addf %24, %26 : vector<16x128xf32>
    %28 = math.rsqrt %27 : vector<16x128xf32>
    %29 = arith.mulf %25, %28 : vector<16x128xf32>
    %c0_10 = arith.constant 0 : index
    %c0_11 = arith.constant 0 : index
    %30 = vector.load %arg2[%c0_10, %c0_11] : memref<1x128xf32, #tpu.memory_space<vmem>>, vector<1x128xf32>
    %31 = vector.broadcast %30 : vector<1x128xf32> to vector<16x128xf32>
    %32 = arith.mulf %29, %31 : vector<16x128xf32>
    %c0_12 = arith.constant 0 : index
    %c0_13 = arith.constant 0 : index
    %33 = vector.load %arg3[%c0_12, %c0_13] : memref<1x128xf32, #tpu.memory_space<vmem>>, vector<1x128xf32>
    %34 = vector.broadcast %33 : vector<1x128xf32> to vector<16x128xf32>
    %35 = arith.addf %32, %34 : vector<16x128xf32>
    %c0_14 = arith.constant 0 : index
    %c0_15 = arith.constant 0 : index
    %36 = vector.load %arg5[%c0_14, %c0_15] : memref<16x128xf32, #tpu.memory_space<vmem>>, vector<16x128xf32>
    tpu.vector_store %arg5[%c0_14, %c0_15], %35 {strides = array<i32>} : memref<16x128xf32, #tpu.memory_space<vmem>>, vector<16x128xf32>,
    return
  }
  func.func @transform_0(%arg0: i32) -> (i32, i32) {
    %c0_i32 = arith.constant 0 : i32
    %c0_i32_0 = arith.constant 0 : i32
    return %arg0, %c0_i32 : i32, i32
  }
  func.func @transform_1(%arg0: i32) -> (i32, i32) {
    %c0_i32 = arith.constant 0 : i32
    %c0_i32_0 = arith.constant 0 : i32
    %c0_i32_1 = arith.constant 0 : i32
    return %c0_i32, %c0_i32_0 : i32, i32
  }
  func.func @transform_2(%arg0: i32) -> (i32, i32) {
    %c0_i32 = arith.constant 0 : i32
    %c0_i32_0 = arith.constant 0 : i32
    %c0_i32_1 = arith.constant 0 : i32
    return %c0_i32, %c0_i32_0 : i32, i32
  }
  func.func @transform_3(%arg0: i32) -> (i32, i32) {
    %c0_i32 = arith.constant 0 : i32
    %c0_i32_0 = arith.constant 0 : i32
    %c0_i32_1 = arith.constant 0 : i32
    return %c0_i32, %c0_i32_0 : i32, i32
  }
  func.func @transform_4(%arg0: i32) -> (i32, i32) {
    %c0_i32 = arith.constant 0 : i32
    %c0_i32_0 = arith.constant 0 : i32
    return %arg0, %c0_i32 : i32, i32
  }
}

</mosaic_0001>

<bundles_post_ra>
// kernel: tpu_custom_call.1
= control target key start
LH: loop header
LB: loop body
LE: loop exit
PB: predicated region body
PF: predicated region fallthrough
CT: control target
= control target key end

     0   :  { %9 = vsyncpa [#allocation3], 0  ;;  %s1283_s0 = inlined_call_operand.hbm [shape: f32[32,128], index: 0, kind: input, shape index: {}]   ;;  %s1284_s1 = inlined_call_operand.vmem [shape: f32[1,128], index: 1, kind: input, shape index: {}]   ;;  %s1285_s2 = inlined_call_operand.vmem [shape: f32[1,128], index: 2, kind: input, shape index: {}]   ;;  %s1286_s3 = inlined_call_operand.hbm [shape: bf16[128,128], index: 3, kind: input, shape index: {}]   ;;  %s1287_s4 = inlined_call_operand.hbm [shape: f32[32,128], index: 4, kind: output, shape index: {}]  }
   0x1   :  { %11 = vsyncpa [#allocation3 + $0x1], 0 }
   0x2   :  { %12 = vsyncpa [#allocation6], 0 }
   0x3   :  { %13 = vsyncpa [#allocation4], 0 }
   0x4   :  { %15 = vsyncpa [#allocation4 + $0x1], 0  ;;  %s1008_s15 = smov 0   ;;  %s1010_s16 = smov 0  }
   0x5   :  { %s1012_s17 = smov 0   ;;  %s1014_s18 = smov 0  }
   0x6 LB: > { %s1029_s19 = sadd.s32 4294967295, %s970_s18   ;;  %s613_s20 = sadd.s32 4294967294, %s970_s18   ;;  %s970_s18 = sphi %s1014_s18, %s1307_s18   ;;  %s966_s17 = sphi %s1012_s17, %s1306_s17   ;;  %s962_s16 = sphi %s1010_s16, %s1305_s16   ;;  %s958_s15 = sphi %s1008_s15, %s1304_s15  }
   0x7   : > { %p41_p0 = scmp.ne.s32.totalorder %s962_s16, %s958_s15  ;;  %p1288_p1 = scmp.eq.s32.totalorder %s1029_s19, 0 }
   0x8   : > { %p134_p3 = scmp.eq.s32.totalorder %s613_s20, 1  ;;  %p614_p5 = scmp.ge.s32.totalorder %s970_s18, 1 }
   0x9   : > { %p1038_p4 = por %p1288_p1, %p41_p0  ;;  %p141_p7 = scmp.lt.s32.totalorder %s970_s18, 3 }
   0xa   : > { %p1043_p6 = por %p134_p3, %p41_p0  ;;  %s972_s24 = smov [#allocation5]  }
   0xb   : > { %s1291_s21 = scalar_select %p1038_p4, 1, 0 }
   0xc   : > { %s1292_s22 = scalar_select %p1043_p6, 1, 0 }
   0xd   : > { %p1048_p8 = pnand %p614_p5, %p141_p7  ;;  %s159_s25 = sshll.u32 %s972_s24, 4  ;;  %s1052_s25 = int_to_ptr.vmem [resolvable:$true] %s159_s25 }
   0xe   : > { %s1064_s27 = sadd.s32 1, %s970_s18   ;;  %s28_s28 = sadd.s32 1, %s966_s17 }
   0xf   : > { %s1293_s23 = scalar_select %p1048_p8, 1, 0 }
  0x10   : > { %p773_p9 = pneg %p1048_p8  ;;  %s25_s29 = ssub.s32 %s970_s18, %s1064_s27 }
  0x11   : > { %s842_s6 = scalar_lea.hbm %s1286_s3, 1024 }
  0x12   : > { %p1059_p11 = pnand %p773_p9, %p1288_p1  ;;  %p843_p12 = scmp.ne.s32.totalorder %s1286_s3, %s842_s6 }
  0x13   : > { %p849_p5 = scmp.lt.u32.totalorder %s842_s6, %s1286_s3 }
  0x14   : > { %p844_p13 = pneg %p1059_p11 }
  0x16   : > { %p845_p0 = pnand %p844_p13, %p843_p12 }
  0x18   : > { %p846_p3 = pneg %p845_p0 }
  0x1a   : > { %p851_p7 = pnand %p849_p5, %p846_p3 }
  0x1c   : > { %854 = shalt.err (!%p851_p7)
}
  0x1d   : > { %s855_s11 = scalar_lea.vmem %s1052_s25, 1024  ;;  %p863_p2 = scmp.lt.s32.totalorder %s1052_s25, %s1052_s25 }
  0x1e   : > { %p856_p9 = scmp.ne.s32.totalorder %s1052_s25, %s855_s11  ;;  %p864_p6 = scmp.lt.s32.totalorder %s855_s11, %s855_s11 }
  0x20   : > { %p858_p10 = pnand %p856_p9, %p844_p13  ;;  %p865_p4 = por %p864_p6, %p863_p2 }
  0x22   : > { %p859_p1 = pneg %p858_p10 }
  0x24   : > { %p866_p8 = pnand %p865_p4, %p859_p1 }
  0x26   : > { %869 = shalt.err (!%p866_p8)
}
  0x27   : > { %s973_s12 = smov 64   ;;  %s974_s13 = smov 4  }
  0x28   : > { %776 = dma.hbm_to_vmem [thread:$0]  (!%p1059_p11), %s1286_s3, 1024, %s1052_s25, [#allocation6], %s973_s12, %s973_s12, %s974_s13  }
  0x29   : > { %p26_p2 = scmp.eq.s32.totalorder %s25_s29, 0  ;;  %p35_p1 = scmp.ne.s32.totalorder %s966_s17, %s962_s16 }
  0x2a   : > { %p36_p4 = scmp.eq.s32.totalorder %s970_s18, 0  ;;  %p786_p6 = scmp.lt.s32.totalorder %s970_s18, 2 }
  0x2b   : > { %s1095_s24 = scalar_select %p26_p2, %s966_s17, %s28_s28  }
  0x2c   : > { %p37_p8 = por %p36_p4, %p35_p1  ;;  %p1295_p10 = scmp.eq.s32.totalorder %s1029_s19, 1 }
  0x2d   : > { %s173_s5 = sand.u32 1, %s966_s17   ;;  %s639_s6 = sshll.u32 %s970_s18, 8 }
  0x2e   : > { %p1099_p12 = por %p1295_p10, %p35_p1  ;;  %s617_s7 = sshll.u32 %s173_s5, 4 }
  0x2f   : > { %s1108_s9 = scalar_lea.hbm %s1283_s0, %s639_s6  ;;  %s177_s25 = scalar_lea.vmem [#allocation2], %s617_s7 }
  0x30   : > { %s184_s28 = sshll.u32 %s177_s25, 4  ;;  %p1110_p11 = pnand %p786_p6, %p37_p8  ;;  %s1114_s28 = int_to_ptr.vmem [resolvable:$true] %s184_s28 }
  0x31   : > { %s1116_s10 = scalar_lea.sflag [#allocation3], %s173_s5  ;;  %s870_s11 = scalar_lea.hbm %s1108_s9, 256 }
  0x32   : > { %p871_p13 = scmp.ne.s32.totalorder %s1108_s9, %s870_s11  ;;  %p872_p0 = pneg %p1110_p11 }
  0x33   : > { %s875_s14 = scalar_lea.hbm %s1283_s0, 512  ;;  %p876_p7 = scmp.lt.u32.totalorder %s1108_s9, %s1283_s0 }
  0x34   : > { %p873_p3 = pnand %p872_p0, %p871_p13  ;;  %p877_p9 = scmp.lt.u32.totalorder %s875_s14, %s870_s11 }
  0x35   : > { %p879_p1 = scmp.lt.u32.totalorder %s870_s11, %s1108_s9 }
  0x36   : > { %p874_p5 = pneg %p873_p3  ;;  %p878_p2 = por %p877_p9, %p876_p7 }
  0x38   : > { %p880_p4 = por %p879_p1, %p878_p2 }
  0x3a   : > { %p881_p6 = pnand %p880_p4, %p874_p5 }
  0x3c   : > { %884 = shalt.err (!%p881_p6)
}
  0x3d   : > { %s885_s5 = scalar_lea.vmem %s1114_s28, 256  ;;  %s975_s7 = smov [#allocation2]  }
  0x3e   : > { %p886_p8 = scmp.ne.s32.totalorder %s1114_s28, %s885_s5  ;;  %s890_s26 = sshll.u32 %s975_s7, 4  ;;  %s891_s26 = int_to_ptr.vmem [resolvable:$false] %s890_s26 }
  0x3f   : > { %s892_s8 = scalar_lea.vmem %s891_s26, 512  ;;  %p893_p3 = scmp.lt.s32.totalorder %s1114_s28, %s891_s26 }
  0x40   : > { %p888_p10 = pnand %p886_p8, %p872_p0  ;;  %p894_p7 = scmp.lt.s32.totalorder %s892_s8, %s885_s5 }
  0x42   : > { %p889_p13 = pneg %p888_p10  ;;  %p895_p9 = por %p894_p7, %p893_p3 }
  0x44   : > { %p896_p2 = pnand %p895_p9, %p889_p13 }
  0x46   : > { %899 = shalt.err (!%p896_p2)
}
  0x47   : > { %s976_s25 = smov 128   ;;  %s977_s11 = smov 8  }
  0x48   : > { %780 = dma.hbm_to_vmem [thread:$0]  (!%p1110_p11), %s1108_s9, 256, %s1114_s28, %s1116_s10, %s976_s25, %s976_s25, %s977_s11  }
  0x49   : > { %p1298_p0 = scmp.ne.s32.totalorder %s1293_s23, 0 }
  0x4a   : > { %s1147_s12 = sand.u32 (!%p1298_p0), 1, %s962_s16   ;;  %p1299_p5 = scmp.ne.s32.totalorder (!%p1298_p0), %s1291_s21, 0 }
  0x4b   : > { %196 = sbr.rel (%p1298_p0) target bundleno = 408 (0x198), region = 36  ;;  %s621_s13 = sshll.u32 (!%p1298_p0), %s1147_s12, 4 }
  0x4c   : > { %s199_s14 = scalar_lea.sflag (!%p1298_p0), [#allocation3], %s1147_s12  ;;  %s202_s20 = scalar_lea.vmem (!%p1298_p0), [#allocation2], %s621_s13 }
  0x52   : > { %945 = dma.done.wait (%p1299_p5), %s199_s14, 256  }
  0x53   : > { %947 = vsyncadd (%p1299_p5), %s199_s14, 4294967040  ;;  %p1300_p11 = scmp.eq.s32.totalorder %s1029_s19, 0 }
  0x55   : > { %949 = dma.done.wait (%p1300_p11), [#allocation6], 1024   ;;  %p1301_p1 = pmov %p1300_p11 }
  0x56   : > { %v978_v0 = vmov 0.0   ;;  %vm979_vm0 = vmmov 0   ;;  %v830_v1 = vld [vmem:[#allocation5] sm:$0xff]   ;;  %v831_v2 = vld [vmem:[#allocation5 + $0x8] sm:$0xff]   ;;  %v832_v3 = vld [vmem:[#allocation5 + $0x10] sm:$0xff]   ;;  %s640_s29 = sshll.u32 %s1029_s19, 8 }
  0x57   : > { %951 = vsyncadd (%p1301_p1), [#allocation6], 4294966272  ;;  %677 = vmatprep.subr.bf16.mxu0 %v978_v0  ;;  %717 = vmatprep.subr.bf16.mxu1 %v978_v0  ;;  %v833_v4 = vld [vmem:[#allocation5 + $0x18] sm:$0xff]   ;;  %v1171_v5 = vld [vmem:[%s202_s20] sm:$0xff]  ;;  %s230_s10 = scalar_lea.vmem [#allocation7], %s621_s13  ;;  %s1237_s26 = scalar_lea.hbm %s1287_s4, %s640_s29 }
  0x58   : > { %693 = vmatprep.mubr.msk.bf16.mxu0 %vm979_vm0, %v978_v0  ;;  %733 = vmatprep.mubr.msk.bf16.mxu1 %vm979_vm0, %v978_v0  ;;  %v1173_v6 = vld [vmem:[%s202_s20 + $0x8] sm:$0xff]  ;;  %v388_v7 = vmul.f32 %v1171_v5, %v1171_v5  ;;  %v834_v9 = vld [vmem:[#allocation5 + $0x20] sm:$0xff]   ;;  %v836_v17 = vld [vmem:[#allocation5 + $0x30] sm:$0xff]   ;;  %s530_s6 = sshll.u32 %s230_s10, 4  ;;  %s517_s8 = scalar_lea.sflag [#allocation4], %s1147_s12  ;;  %s1239_s6 = int_to_ptr.vmem [resolvable:$true] %s530_s6 }
  0x59   : > { %678 = vmatpush3.bf16.msra.mxu0 %v830_v1  ;;  %718 = vmatpush3.bf16.msra.mxu1 %v830_v1  ;;  %v389_v8 = vmul.f32 %v1173_v6, %v1173_v6  ;;  %v1185_v10 = vpack.c.bf16 %v1173_v6, %v1171_v5  ;;  %v835_v12 = vld [vmem:[#allocation5 + $0x28] sm:$0xff]   ;;  %v837_v22 = vld [vmem:[#allocation5 + $0x38] sm:$0xff]   ;;  %v632_v47 = vld [vmem:[%s1284_s1] ss:$0 sm:$0xff]  ;;  %s900_s19 = scalar_lea.vmem %s1239_s6, 256  ;;  %s980_s25 = smov [#allocation7]  }
  0x5a   : > { %679 = vmatprep.subr.bf16.mxu0 %v978_v0  ;;  %719 = vmatprep.subr.bf16.mxu1 %v978_v0  ;;  %v633_v51 = vld [vmem:[%s1285_s2] ss:$0 sm:$0xff]  ;;  %p901_p4 = scmp.ne.s32.totalorder %s1239_s6, %s900_s19  ;;  %s904_s11 = sshll.u32 %s980_s25, 4  ;;  %s905_s11 = int_to_ptr.vmem [resolvable:$false] %s904_s11 }
  0x5b   : > { %v1187_v11 = vpack.c.bf16 %v389_v8, %v388_v7  ;;  %v253_v13 = vunpack.c.l.bf16 %v1185_v10  ;;  %v254_v14 = vunpack.c.h.bf16 %v1185_v10  ;;  %s906_s13 = scalar_lea.vmem %s905_s11, 512  ;;  %p907_p10 = scmp.lt.s32.totalorder %s1239_s6, %s905_s11 }
  0x5c   : > { %p902_p6 = pnand %p901_p4, %p1099_p12  ;;  %p908_p13 = scmp.lt.s32.totalorder %s906_s13, %s900_s19 }
  0x5d   : > { %680 = vmatpush3.bf16.msra.mxu0 %v831_v2  ;;  %720 = vmatpush3.bf16.msra.mxu1 %v831_v2  ;;  %v391_v15 = vunpack.c.l.bf16 %v1187_v11  ;;  %v392_v16 = vunpack.c.h.bf16 %v1187_v11  ;;  %v255_v18 = vsub.f32 %v1171_v5, %v253_v13  ;;  %v256_v19 = vsub.f32 %v1173_v6, %v254_v14 }
  0x5e   : > { %681 = vmatprep.subr.bf16.mxu0 %v978_v0  ;;  %721 = vmatprep.subr.bf16.mxu1 %v978_v0  ;;  %p903_p8 = pneg %p902_p6  ;;  %p909_p3 = por %p908_p13, %p907_p10 }
  0x5f   : > { %v393_v20 = vsub.f32 %v388_v7, %v391_v15  ;;  %v394_v21 = vsub.f32 %v389_v8, %v392_v16  ;;  %v257_v23 = vpack.c.bf16 %v256_v19, %v255_v18 }
  0x60   : > { %p910_p7 = pnand %p909_p3, %p903_p8 }
  0x61   : > { %682 = vmatpush3.bf16.msra.mxu0 %v832_v3  ;;  %722 = vmatpush3.bf16.msra.mxu1 %v832_v3  ;;  %v395_v24 = vpack.c.bf16 %v394_v21, %v393_v20 }
  0x62   : > { %683 = vmatprep.subr.bf16.mxu0 %v978_v0  ;;  %723 = vmatprep.subr.bf16.mxu1 %v978_v0 }
  0x65   : > { %684 = vmatpush3.bf16.msra.mxu0 %v833_v4  ;;  %724 = vmatpush3.bf16.msra.mxu1 %v833_v4 }
  0x66   : > { %685 = vmatprep.subr.bf16.mxu0 %v978_v0  ;;  %725 = vmatprep.subr.bf16.mxu1 %v978_v0 }
  0x69   : > { %686 = vmatpush3.bf16.msra.mxu0 %v834_v9  ;;  %726 = vmatpush3.bf16.msra.mxu1 %v834_v9 }
  0x6a   : > { %687 = vmatprep.subr.bf16.mxu0 %v978_v0  ;;  %727 = vmatprep.subr.bf16.mxu1 %v978_v0 }
  0x6d   : > { %688 = vmatpush3.bf16.msra.mxu0 %v835_v12  ;;  %728 = vmatpush3.bf16.msra.mxu1 %v835_v12 }
  0x6e   : > { %689 = vmatprep.subr.bf16.mxu0 %v978_v0  ;;  %729 = vmatprep.subr.bf16.mxu1 %v978_v0 }
  0x71   : > { %690 = vmatpush3.bf16.msra.mxu0 %v836_v17  ;;  %730 = vmatpush3.bf16.msra.mxu1 %v836_v17 }
  0x72   : > { %691 = vmatprep.subr.bf16.mxu0 %v978_v0  ;;  %731 = vmatprep.subr.bf16.mxu1 %v978_v0 }
  0x75   : > { %692 = vmatpush3.bf16.msra.mxu0 %v837_v22  ;;  %732 = vmatpush3.bf16.msra.mxu1 %v837_v22 }
  0x76   : > { %697 = vmatprep.subr.bf16.mxu0 %v978_v0  ;;  %737 = vmatprep.subr.bf16.mxu1 %v978_v0 }
  0x78   : > { %694 = vmatmul.mubr.bf16.vlgmr.msra.gmra.mrb[0].mxu0 %v257_v23  ;;  %734 = vmatmul.mubr.bf16.vlgmr.msra.gmra.mrb[0].mxu1 %v395_v24 }
  0x79   : > { %698 = vmatpush3.bf16.msra.mxu0 %v830_v1  ;;  %738 = vmatpush3.bf16.msra.mxu1 %v830_v1 }
  0x7a   : > { %699 = vmatprep.subr.bf16.mxu0 %v978_v0  ;;  %739 = vmatprep.subr.bf16.mxu1 %v978_v0 }
  0x7b   : > { %713 = vmatprep.mubr.msk.bf16.mxu0 %vm979_vm0, %v978_v0  ;;  %753 = vmatprep.mubr.msk.bf16.mxu1 %vm979_vm0, %v978_v0 }
  0x7d   : > { %700 = vmatpush3.bf16.msra.mxu0 %v831_v2  ;;  %740 = vmatpush3.bf16.msra.mxu1 %v831_v2 }
  0x7e   : > { %701 = vmatprep.subr.bf16.mxu0 %v978_v0  ;;  %741 = vmatprep.subr.bf16.mxu1 %v978_v0 }
  0x81   : > { %702 = vmatpush3.bf16.msra.mxu0 %v832_v3  ;;  %742 = vmatpush3.bf16.msra.mxu1 %v832_v3 }
  0x82   : > { %703 = vmatprep.subr.bf16.mxu0 %v978_v0  ;;  %743 = vmatprep.subr.bf16.mxu1 %v978_v0 }
  0x85   : > { %704 = vmatpush3.bf16.msra.mxu0 %v833_v4  ;;  %744 = vmatpush3.bf16.msra.mxu1 %v833_v4 }
  0x86   : > { %705 = vmatprep.subr.bf16.mxu0 %v978_v0  ;;  %745 = vmatprep.subr.bf16.mxu1 %v978_v0 }
  0x89   : > { %706 = vmatpush3.bf16.msra.mxu0 %v834_v9  ;;  %746 = vmatpush3.bf16.msra.mxu1 %v834_v9 }
  0x8a   : > { %707 = vmatprep.subr.bf16.mxu0 %v978_v0  ;;  %747 = vmatprep.subr.bf16.mxu1 %v978_v0 }
  0x8d   : > { %708 = vmatpush3.bf16.msra.mxu0 %v835_v12  ;;  %748 = vmatpush3.bf16.msra.mxu1 %v835_v12 }
  0x8e   : > { %709 = vmatprep.subr.bf16.mxu0 %v978_v0  ;;  %749 = vmatprep.subr.bf16.mxu1 %v978_v0 }
  0x91   : > { %710 = vmatpush3.bf16.msra.mxu0 %v836_v17  ;;  %750 = vmatpush3.bf16.msra.mxu1 %v836_v17 }
  0x92   : > { %711 = vmatprep.subr.bf16.mxu0 %v978_v0  ;;  %751 = vmatprep.subr.bf16.mxu1 %v978_v0 }
  0x95   : > { %712 = vmatpush3.bf16.msra.mxu0 %v837_v22  ;;  %752 = vmatpush3.bf16.msra.mxu1 %v837_v22 }
  0x98   : > { %714 = vmatmul.mubr.bf16.vlgmr.msra.gmra.mrb[0].mxu0 %v1185_v10  ;;  %754 = vmatmul.mubr.bf16.vlgmr.msra.gmra.mrb[0].mxu1 %v1187_v11 }
 0x16b   : > { %v381_v25 = vpop.f32.mrb[0].mxu0  ;;  %v471_v26 = vpop.f32.mrb[0].mxu1 }
 0x16c   : > { %v478_v27 = vmul.f32 0.03125, %v381_v25  ;;  %v715_v28 = vpop.f32.mrb[1].mxu0  ;;  %v755_v29 = vpop.f32.mrb[1].mxu1  ;;  %v480_v33 = vmul.f32 0.03125, %v471_v26 }
 0x16d   : > { %v384_v30 = vpop.f32.mrb[2].mxu0  ;;  %v474_v31 = vpop.f32.mrb[2].mxu1 }
 0x16e   : > { %v482_v32 = vmul.f32 %v478_v27, %v478_v27  ;;  %v479_v34 = vmul.f32 0.03125, %v384_v30  ;;  %v716_v35 = vpop.f32.mrb[3].mxu0  ;;  %v756_v36 = vpop.f32.mrb[3].mxu1  ;;  %v481_v39 = vmul.f32 0.03125, %v474_v31  ;;  %v488_v45 = vsub.f32 %v1171_v5, %v478_v27 }
 0x170   : > { %v484_v37 = vsub.f32 %v480_v33, %v482_v32  ;;  %v483_v38 = vmul.f32 %v479_v34, %v479_v34  ;;  %v489_v49 = vsub.f32 %v1173_v6, %v479_v34 }
 0x172   : > { %v486_v40 = vmax.f32 %v484_v37, 0.0  ;;  %v485_v41 = vsub.f32 %v481_v39, %v483_v38 }
 0x174   : > { %v490_v42 = vadd.f32 1e-05, %v486_v40  ;;  %v487_v43 = vmax.f32 %v485_v41, 0.0 }
 0x176   : > { %838 = vrsqrt.f32 %v490_v42  ;;  %v491_v44 = vadd.f32 1e-05, %v487_v43 }
 0x178   : > { %840 = vrsqrt.f32 %v491_v44 }
 0x180   : > { %v839_v46 = vpop.eup %838 }
 0x181   : > { %v494_v48 = vmul.f32 %v839_v46, %v488_v45 }
 0x182   : > { %v841_v50 = vpop.eup %840 }
 0x183   : > { %v503_v52 = vmul.f32 %v632_v47, %v494_v48  ;;  %v495_v53 = vmul.f32 %v841_v50, %v489_v49 }
 0x185   : > { %v512_v54 = vadd.f32 %v633_v51, %v503_v52  ;;  %v504_v55 = vmul.f32 %v632_v47, %v495_v53 }
 0x187   : > { %v513_v56 = vadd.f32 %v633_v51, %v504_v55  ;;  %514 = vst [vmem:[%s230_s10] sm:$0xff] %v512_v54 }
 0x189   : > { %515 = vst [vmem:[%s230_s10 + $0x8] sm:$0xff] %v513_v56 }
 0x18a   : > { %913 = shalt.err (!%p910_p7)
}
 0x18b   : > { %s914_s14 = scalar_lea.hbm %s1237_s26, 256  ;;  %s918_s23 = scalar_lea.hbm %s1287_s4, 512 }
 0x18c   : > { %p915_p9 = scmp.ne.s32.totalorder %s1237_s26, %s914_s14  ;;  %p919_p5 = scmp.lt.u32.totalorder %s1237_s26, %s1287_s4 }
 0x18d   : > { %p920_p11 = scmp.lt.u32.totalorder %s918_s23, %s914_s14  ;;  %p922_p4 = scmp.lt.u32.totalorder %s914_s14, %s1237_s26 }
 0x18e   : > { %p916_p2 = pnand %p915_p9, %p1099_p12 }
 0x18f   : > { %p921_p1 = por %p920_p11, %p919_p5 }
 0x190   : > { %p917_p0 = pneg %p916_p2 }
 0x191   : > { %p923_p6 = por %p922_p4, %p921_p1 }
 0x193   : > { %p924_p8 = pnand %p923_p6, %p917_p0 }
 0x195   : > { %927 = shalt.err (!%p924_p8)
}
 0x196   : > { %s981_s29 = smov 128   ;;  %s982_s10 = smov 8  }
 0x197   : > { %771 = dma.vmem_to_hbm [thread:$0]  (%p1099_p12), %s1239_s6, 256, %s1237_s26, %s517_s8, %s981_s29, %s981_s29, %s982_s10  }
 0x198 PF: > { %s545_s5 = sand.u32 1, %s958_s15   ;;  %p1302_p10 = scmp.ne.s32.totalorder %s1292_s22, 0 }
 0x199   : > { %p1303_p13 = scmp.ge.s32.totalorder %s970_s18, 2  ;;  %s546_s7 = scalar_lea.sflag [#allocation4], %s545_s5 }
 0x19b   : > { %p782_p3 = pnand %p1303_p13, %p1302_p10 }
 0x19d   : > { %953 = dma.done.wait (!%p782_p3), %s546_s7, 256  }
 0x19e   : > { %955 = vsyncadd (!%p782_p3), %s546_s7, 4294967040  ;;  %p18_p7 = scmp.ge.s32.totalorder %s1064_s27, 4   ;;  %s1304_s15 = smov %s962_s16 }
 0x19f   : > { %s1305_s16 = smov %s966_s17  ;;  %s1306_s17 = smov %s1095_s24 }
 0x1a0   : > { %s1307_s18 = smov %s1064_s27  ;;  %20 = sbr.rel (!%p18_p7) target bundleno = 6 (0x6), region = 85 }
 0x1a7   :  { %551 = vsyncpa [#allocation3], 1 }
 0x1a8   :  { %553 = vsyncpa [#allocation3 + $0x1], 1 }
 0x1a9   :  { %554 = vsyncpa [#allocation6], 1 }
 0x1aa   :  { %555 = vsyncpa [#allocation4], 1 }
 0x1ab   :  { %557 = vsyncpa [#allocation4 + $0x1], 1 }

</bundles_post_ra>
